<compile_context>
chip_gen: v6e
topology: v6e:2x2x1
jax: 0.10.0
libtpu: 0.0.40
codegen_flags: <defaults>
</compile_context>

<pallas_src>
import jax
import jax.numpy as jnp
from jax.experimental import pallas as pl
from jax.experimental.pallas import tpu as pltpu


def _vmem_limit_bytes():
    """Per-generation scoped-VMEM limit (fallback: 64 MiB physical assumption)."""
    try:
        cap = int(pltpu.get_tpu_info().vmem_capacity_bytes)
    except Exception:
        cap = 64 * 1024 * 1024
    return max(32 * 1024 * 1024, min(int(cap * 0.55), 100 * 1024 * 1024))


def _pick_row_tile(ho, wo, n, cin, cout_pad, budget_bytes):
    """Largest divisor TH of `ho` whose per-step working set fits the budget."""
    c2, k = 4 * cin, 16 * cin
    best = 1
    for th in range(1, ho + 1):
        if ho % th:
            continue
        m = th * wo
        if m > 4096:                                   # keep matmul M reasonable
            continue
        in_tile = (th + 1) * (wo + 1) * c2 * 2         # bf16 input tile
        lhs = m * k * 2                                # bf16 big-K LHS
        acc = 2 * m * cout_pad * 4                     # f32 acc + affine temp
        out_t = 2 * m * cout_pad * 4                   # double-buffered output
        w_b = 2 * k * cout_pad * 2                     # double-buffered weight
        if 2 * in_tile + lhs + acc + out_t + w_b <= budget_bytes:
            best = th
    # Keep at least 2 grid steps when possible (both v7x TensorCores busy).
    if n * (ho // best) < 2:
        for th in range(best, 0, -1):
            if ho % th == 0 and n * (ho // th) >= 2:
                best = th
                break
    return best


@jax.jit
def g_down_block(x_nchw, weight, gamma, beta, eps=1e-5):
    N, Cin, H, W = x_nchw.shape
    Cout, _, KH, KW = weight.shape
    assert KH == 4 and KW == 4
    assert H % 2 == 0 and W % 2 == 0
    Ho, Wo = H // 2, W // 2
    Hs, Ws = Ho + 1, Wo + 1                 # space-to-depth grid (+1 overlap row/col)
    C2 = 4 * Cin                            # s2d channels
    K = 4 * C2                              # full contraction size = 16*Cin
    LANES = 128
    Cout_pad = ((Cout + LANES - 1) // LANES) * LANES
    M_total = N * Ho * Wo

    vmem_limit = _vmem_limit_bytes()
    TH = _pick_row_tile(Ho, Wo, N, Cin, Cout_pad, int(vmem_limit * 0.7))
    HB = Ho // TH
    G = N * HB                              # flat grid: one step per row tile
    M_tile = TH * Wo

    # ---------------- layout glue (minimal expansion) -------------------------
    x = jnp.transpose(x_nchw, (0, 2, 3, 1))                          # NHWC
    xp = jnp.pad(x, ((0, 0), (1, 1), (1, 1), (0, 0)), mode="reflect")
    xs = xp.reshape(N, Hs, 2, Ws, 2, Cin)
    xs = jnp.transpose(xs, (0, 1, 3, 2, 4, 5)).reshape(N, Hs, Ws, C2)
    xs = xs.astype(jnp.bfloat16)                                     # bf16 MXU feed
    # Duplicate the one overlap row per tile (+1/TH extra data) so each grid
    # step is a single contiguous block -> no xa/xb split, no in-kernel concat.
    row_idx = jnp.arange(HB)[:, None] * TH + jnp.arange(TH + 1)[None, :]
    xt = xs[:, row_idx].reshape(G, TH + 1, Ws, C2)

    # weight (Cout, Cin, 4, 4) -> rows k = (di*2+dj)*C2 + (dy*2*Cin + dx*Cin + c)
    w = jnp.transpose(weight, (2, 3, 1, 0))            # (kh, kw, c, o)
    w = w.reshape(2, 2, 2, 2, Cin, Cout)               # (di, dy, dj, dx, c, o)
    w = jnp.transpose(w, (0, 2, 1, 3, 4, 5))           # (di, dj, dy, dx, c, o)
    w = w.reshape(K, Cout)
    wmat = jnp.pad(w, ((0, 0), (0, Cout_pad - Cout))).astype(jnp.bfloat16)

    # ---------------- in-kernel conv (shared by both passes) ------------------
    def _conv_tile(x_ref, w_ref):
        a = x_ref[0]                                          # (TH+1, Ws, C2) bf16
        p00 = a[0:TH, 0:Wo, :].reshape(M_tile, C2)            # (di, dj) = (0, 0)
        p01 = a[0:TH, 1:Ws, :].reshape(M_tile, C2)            # (0, 1)
        p10 = a[1:TH + 1, 0:Wo, :].reshape(M_tile, C2)        # (1, 0)
        p11 = a[1:TH + 1, 1:Ws, :].reshape(M_tile, C2)        # (1, 1)
        lhs = jnp.concatenate([p00, p01, p10, p11], axis=-1)  # (M_tile, K) bf16
        return jnp.dot(lhs, w_ref[...],
                       preferred_element_type=jnp.float32)    # (M_tile, Cout_pad)

    def stats_kernel(x_ref, w_ref, stat_ref):
        acc = _conv_tile(x_ref, w_ref)
        s = jnp.sum(acc, axis=0, keepdims=True)               # (1, Cout_pad)
        mu = s * (1.0 / M_tile)
        d = acc - mu
        ss = jnp.sum(d * d, axis=0, keepdims=True)             # centered sumsq
        stat_ref[0] = jnp.concatenate([s, ss], axis=0)         # (2, Cout_pad)

    def conv_bn_lrelu_kernel(x_ref, w_ref, scale_ref, bias_ref, o_ref):
        acc = _conv_tile(x_ref, w_ref)
        y = acc * scale_ref[...] + bias_ref[...]               # f32 BN affine
        y = jnp.where(y >= 0.0, y, 0.2 * y)                    # LeakyReLU(0.2)
        o_ref[0] = y[:, :Cout].astype(o_ref.dtype)             # one compact store

    # ---------------- specs ----------------------------------------------------
    x_spec = pl.BlockSpec((1, TH + 1, Ws, C2), lambda g: (g, 0, 0, 0))
    w_spec = pl.BlockSpec((K, Cout_pad), lambda g: (0, 0))
    sb_spec = pl.BlockSpec((1, Cout_pad), lambda g: (0, 0))

    cparams = pltpu.CompilerParams(
        dimension_semantics=("parallel",),
        vmem_limit_bytes=vmem_limit)

    flops = 2 * M_total * K * Cout_pad
    xt_bytes = G * (TH + 1) * Ws * C2 * 2
    w_bytes = K * Cout_pad * 2

    # ---- pass 1: conv -> per-tile partial BN statistics ----------------------
    stats = pl.pallas_call(
        stats_kernel,
        out_shape=jax.ShapeDtypeStruct((G, 2, Cout_pad), jnp.float32),
        grid=(G,),
        in_specs=[x_spec, w_spec],
        out_specs=pl.BlockSpec((1, 2, Cout_pad), lambda g: (g, 0, 0)),
        compiler_params=cparams,
        cost_estimate=pl.CostEstimate(
            flops=flops, transcendentals=0,
            bytes_accessed=xt_bytes + w_bytes + G * 2 * Cout_pad * 4),
    )(xt, wmat)

    # ---- Chan-merged batch statistics (numerically stable), fold into affine --
    sums = stats[:, 0, :]                                      # (G, Cout_pad)
    css = stats[:, 1, :]
    mean = jnp.sum(sums, axis=0) / M_total
    tile_mean = sums / M_tile
    tss = jnp.sum(css, axis=0) + M_tile * jnp.sum((tile_mean - mean) ** 2, axis=0)
    var = jnp.maximum(tss / M_total, 0.0)                      # biased (PyTorch BN)

    gamma_pad = jnp.pad(gamma.astype(jnp.float32), (0, Cout_pad - Cout))
    beta_pad = jnp.pad(beta.astype(jnp.float32), (0, Cout_pad - Cout))
    inv = gamma_pad * jax.lax.rsqrt(var + eps)
    scale = inv.reshape(1, Cout_pad)
    bias = (beta_pad - mean * inv).reshape(1, Cout_pad)

    # ---- pass 2: conv + BN affine + LeakyReLU, single compact HBM write ------
    y = pl.pallas_call(
        conv_bn_lrelu_kernel,
        out_shape=jax.ShapeDtypeStruct((G, M_tile, Cout), jnp.float32),
        grid=(G,),
        in_specs=[x_spec, w_spec, sb_spec, sb_spec],
        out_specs=pl.BlockSpec((1, M_tile, Cout), lambda g: (g, 0, 0)),
        compiler_params=cparams,
        cost_estimate=pl.CostEstimate(
            flops=flops, transcendentals=0,
            bytes_accessed=xt_bytes + w_bytes + 2 * Cout_pad * 4
                           + G * M_tile * Cout * 4),
    )(xt, wmat, scale, bias)

    # (G, TH*Wo, Cout) -> (N, Ho, Wo, Cout) is a pure contiguous reshape.
    y = y.reshape(N, Ho, Wo, Cout)
    return jnp.transpose(y, (0, 3, 1, 2))                      # NCHW


# ---------------------------------------------------------------------------
# Pure-JAX reference (sanity check)
# ---------------------------------------------------------------------------
def reference(x_nchw, weight, gamma, beta, eps=1e-5):
    xp = jnp.pad(x_nchw, ((0, 0), (0, 0), (1, 1), (1, 1)), mode="reflect")
    conv = jax.lax.conv_general_dilated(
        xp, weight, window_strides=(2, 2), padding="VALID",
        dimension_numbers=("NCHW", "OIHW", "NCHW"),
        precision=jax.lax.Precision.HIGHEST)
    mean = conv.mean(axis=(0, 2, 3), keepdims=True)
    var = conv.var(axis=(0, 2, 3), keepdims=True)
    y = (conv - mean) / jnp.sqrt(var + eps)
    y = y * gamma.reshape(1, -1, 1, 1) + beta.reshape(1, -1, 1, 1)
    return jnp.where(y >= 0.0, y, 0.2 * y)


if __name__ == "__main__":
    key = jax.random.PRNGKey(0)
    k1, k2, k3, k4 = jax.random.split(key, 4)

    N, Cin, H, W = 2, 4, 16, 16
    Cout, KH, KW = 8, 4, 4

    x = jax.random.normal(k1, (N, Cin, H, W), dtype=jnp.float32)
    weight = 0.05 * jax.random.normal(k2, (Cout, Cin, KH, KW), dtype=jnp.float32)
    gamma = 1.0 + 0.1 * jax.random.normal(k3, (Cout,), dtype=jnp.float32)
    beta = 0.1 * jax.random.normal(k4, (Cout,), dtype=jnp.float32)

    out = jax.block_until_ready(g_down_block(x, weight, gamma, beta))
    ref = reference(x, weight, gamma, beta)

    assert out.shape == (N, Cout, H // 2, W // 2), out.shape
    max_err = float(jnp.max(jnp.abs(out - ref)))
    assert max_err < 5e-2, f"max abs err {max_err}"

    print("KERNEL_OK")
</pallas_src>

<mosaic_0001>
module attributes {stable_mosaic.version = 11 : i64} {
  func.func @stats_kernel(%arg0: i32, %arg1: memref<1x9x9x16xbf16, #tpu.memory_space<vmem>>, %arg2: memref<64x128xbf16, #tpu.memory_space<vmem>>, %arg3: memref<1x2x128xf32, #tpu.memory_space<vmem>>) attributes {dimension_semantics = [#tpu.dimension_semantics<parallel>], iteration_bounds = array<i64: 2>, scalar_prefetch = 0 : i64, scratch_operands = 0 : i64, tpu.core_type = #tpu.core_type<tc>, window_params = [{transform_indices = @transform_0, window_bounds = array<i64: 1, 9, 9, 16>}, {pipeline_mode = #tpu.pipeline_mode<synchronous>, transform_indices = @transform_1, window_bounds = array<i64: 64, 128>}, {transform_indices = @transform_2, window_bounds = array<i64: 1, 2, 128>}]} {
    %c0 = arith.constant 0 : index
    %c0_0 = arith.constant 0 : index
    %c0_1 = arith.constant 0 : index
    %c0_2 = arith.constant 0 : index
    %0 = vector.load %arg1[%c0, %c0_0, %c0_1, %c0_2] : memref<1x9x9x16xbf16, #tpu.memory_space<vmem>>, vector<1x9x9x16xbf16>
    %1 = vector.shape_cast %0 : vector<1x9x9x16xbf16> to vector<9x9x16xbf16>
    %2 = vector.extract_strided_slice %1 {offsets = [0, 0, 0], sizes = [8, 8, 16], strides = [1, 1, 1]} : vector<9x9x16xbf16> to vector<8x8x16xbf16>
    %3 = vector.shape_cast %2 : vector<8x8x16xbf16> to vector<64x16xbf16>
    %4 = vector.extract_strided_slice %1 {offsets = [0, 1, 0], sizes = [8, 8, 16], strides = [1, 1, 1]} : vector<9x9x16xbf16> to vector<8x8x16xbf16>
    %5 = vector.shape_cast %4 : vector<8x8x16xbf16> to vector<64x16xbf16>
    %6 = vector.extract_strided_slice %1 {offsets = [1, 0, 0], sizes = [8, 8, 16], strides = [1, 1, 1]} : vector<9x9x16xbf16> to vector<8x8x16xbf16>
    %7 = vector.shape_cast %6 : vector<8x8x16xbf16> to vector<64x16xbf16>
    %8 = vector.extract_strided_slice %1 {offsets = [1, 1, 0], sizes = [8, 8, 16], strides = [1, 1, 1]} : vector<9x9x16xbf16> to vector<8x8x16xbf16>
    %9 = vector.shape_cast %8 : vector<8x8x16xbf16> to vector<64x16xbf16>
    %10 = tpu.concatenate %3, %5, %7, %9 in 1 : vector<64x16xbf16>, vector<64x16xbf16>, vector<64x16xbf16>, vector<64x16xbf16> -> vector<64x64xbf16>
    %c0_3 = arith.constant 0 : index
    %c0_4 = arith.constant 0 : index
    %11 = vector.load %arg2[%c0_3, %c0_4] : memref<64x128xbf16, #tpu.memory_space<vmem>>, vector<64x128xbf16>
    %cst = arith.constant dense<0.000000e+00> : vector<64x128xf32>
    %12 = tpu.matmul %10, %11, %cst {dimension_numbers = #tpu.dot_dimension_numbers<[1], [0], [0], [1], [0, 0, 1, 1], [], []>} : vector<64x64xbf16>, vector<64x128xbf16>, vector<64x128xf32> -> vector<64x128xf32>
    %cst_5 = arith.constant dense<0.000000e+00> : vector<128xf32>
    %13 = vector.multi_reduction <add>, %12, %cst_5 [0] : vector<64x128xf32> to vector<128xf32>
    %14 = vector.shape_cast %13 : vector<128xf32> to vector<1x128xf32>
    %cst_6 = arith.constant 1.562500e-02 : f32
    %15 = vector.broadcast %cst_6 : f32 to vector<1x128xf32>
    %16 = arith.mulf %14, %15 : vector<1x128xf32>
    %17 = vector.broadcast %16 : vector<1x128xf32> to vector<64x128xf32>
    %18 = arith.subf %12, %17 : vector<64x128xf32>
    %19 = arith.mulf %18, %18 : vector<64x128xf32>
    %cst_7 = arith.constant dense<0.000000e+00> : vector<128xf32>
    %20 = vector.multi_reduction <add>, %19, %cst_7 [0] : vector<64x128xf32> to vector<128xf32>
    %21 = vector.shape_cast %20 : vector<128xf32> to vector<1x128xf32>
    %22 = tpu.concatenate %14, %21 in 0 : vector<1x128xf32>, vector<1x128xf32> -> vector<2x128xf32>
    %c0_8 = arith.constant 0 : index
    %c0_9 = arith.constant 0 : index
    %c0_10 = arith.constant 0 : index
    %23 = vector.load %arg3[%c0_8, %c0_9, %c0_10] : memref<1x2x128xf32, #tpu.memory_space<vmem>>, vector<1x2x128xf32>
    %24 = vector.shape_cast %23 : vector<1x2x128xf32> to vector<2x128xf32>
    %25 = vector.shape_cast %22 : vector<2x128xf32> to vector<1x2x128xf32>
    tpu.vector_store %arg3[%c0_8, %c0_9, %c0_10], %25 {strides = array<i32>} : memref<1x2x128xf32, #tpu.memory_space<vmem>>, vector<1x2x128xf32>,
    return
  }
  func.func @transform_0(%arg0: i32) -> (i32, i32, i32, i32) {
    %c0_i32 = arith.constant 0 : i32
    %c0_i32_0 = arith.constant 0 : i32
    %c0_i32_1 = arith.constant 0 : i32
    %c0_i32_2 = arith.constant 0 : i32
    return %arg0, %c0_i32, %c0_i32_0, %c0_i32_1 : i32, i32, i32, i32
  }
  func.func @transform_1(%arg0: i32) -> (i32, i32) {
    %c0_i32 = arith.constant 0 : i32
    %c0_i32_0 = arith.constant 0 : i32
    %c0_i32_1 = arith.constant 0 : i32
    return %c0_i32, %c0_i32_0 : i32, i32
  }
  func.func @transform_2(%arg0: i32) -> (i32, i32, i32) {
    %c0_i32 = arith.constant 0 : i32
    %c0_i32_0 = arith.constant 0 : i32
    %c0_i32_1 = arith.constant 0 : i32
    return %arg0, %c0_i32, %c0_i32_0 : i32, i32, i32
  }
}

module attributes {stable_mosaic.version = 11 : i64} {
  func.func @conv_bn_lrelu_kernel(%arg0: i32, %arg1: memref<1x9x9x16xbf16, #tpu.memory_space<vmem>>, %arg2: memref<64x128xbf16, #tpu.memory_space<vmem>>, %arg3: memref<1x128xf32, #tpu.memory_space<vmem>>, %arg4: memref<1x128xf32, #tpu.memory_space<vmem>>, %arg5: memref<1x64x8xf32, #tpu.memory_space<vmem>>) attributes {dimension_semantics = [#tpu.dimension_semantics<parallel>], iteration_bounds = array<i64: 2>, scalar_prefetch = 0 : i64, scratch_operands = 0 : i64, tpu.core_type = #tpu.core_type<tc>, window_params = [{transform_indices = @transform_0, window_bounds = array<i64: 1, 9, 9, 16>}, {pipeline_mode = #tpu.pipeline_mode<synchronous>, transform_indices = @transform_1, window_bounds = array<i64: 64, 128>}, {pipeline_mode = #tpu.pipeline_mode<synchronous>, transform_indices = @transform_2, window_bounds = array<i64: 1, 128>}, {pipeline_mode = #tpu.pipeline_mode<synchronous>, transform_indices = @transform_3, window_bounds = array<i64: 1, 128>}, {transform_indices = @transform_4, window_bounds = array<i64: 1, 64, 8>}]} {
    %c0 = arith.constant 0 : index
    %c0_0 = arith.constant 0 : index
    %c0_1 = arith.constant 0 : index
    %c0_2 = arith.constant 0 : index
    %0 = vector.load %arg1[%c0, %c0_0, %c0_1, %c0_2] : memref<1x9x9x16xbf16, #tpu.memory_space<vmem>>, vector<1x9x9x16xbf16>
    %1 = vector.shape_cast %0 : vector<1x9x9x16xbf16> to vector<9x9x16xbf16>
    %2 = vector.extract_strided_slice %1 {offsets = [0, 0, 0], sizes = [8, 8, 16], strides = [1, 1, 1]} : vector<9x9x16xbf16> to vector<8x8x16xbf16>
    %3 = vector.shape_cast %2 : vector<8x8x16xbf16> to vector<64x16xbf16>
    %4 = vector.extract_strided_slice %1 {offsets = [0, 1, 0], sizes = [8, 8, 16], strides = [1, 1, 1]} : vector<9x9x16xbf16> to vector<8x8x16xbf16>
    %5 = vector.shape_cast %4 : vector<8x8x16xbf16> to vector<64x16xbf16>
    %6 = vector.extract_strided_slice %1 {offsets = [1, 0, 0], sizes = [8, 8, 16], strides = [1, 1, 1]} : vector<9x9x16xbf16> to vector<8x8x16xbf16>
    %7 = vector.shape_cast %6 : vector<8x8x16xbf16> to vector<64x16xbf16>
    %8 = vector.extract_strided_slice %1 {offsets = [1, 1, 0], sizes = [8, 8, 16], strides = [1, 1, 1]} : vector<9x9x16xbf16> to vector<8x8x16xbf16>
    %9 = vector.shape_cast %8 : vector<8x8x16xbf16> to vector<64x16xbf16>
    %10 = tpu.concatenate %3, %5, %7, %9 in 1 : vector<64x16xbf16>, vector<64x16xbf16>, vector<64x16xbf16>, vector<64x16xbf16> -> vector<64x64xbf16>
    %c0_3 = arith.constant 0 : index
    %c0_4 = arith.constant 0 : index
    %11 = vector.load %arg2[%c0_3, %c0_4] : memref<64x128xbf16, #tpu.memory_space<vmem>>, vector<64x128xbf16>
    %cst = arith.constant dense<0.000000e+00> : vector<64x128xf32>
    %12 = tpu.matmul %10, %11, %cst {dimension_numbers = #tpu.dot_dimension_numbers<[1], [0], [0], [1], [0, 0, 1, 1], [], []>} : vector<64x64xbf16>, vector<64x128xbf16>, vector<64x128xf32> -> vector<64x128xf32>
    %c0_5 = arith.constant 0 : index
    %c0_6 = arith.constant 0 : index
    %13 = vector.load %arg3[%c0_5, %c0_6] : memref<1x128xf32, #tpu.memory_space<vmem>>, vector<1x128xf32>
    %14 = vector.broadcast %13 : vector<1x128xf32> to vector<64x128xf32>
    %15 = arith.mulf %12, %14 : vector<64x128xf32>
    %c0_7 = arith.constant 0 : index
    %c0_8 = arith.constant 0 : index
    %16 = vector.load %arg4[%c0_7, %c0_8] : memref<1x128xf32, #tpu.memory_space<vmem>>, vector<1x128xf32>
    %17 = vector.broadcast %16 : vector<1x128xf32> to vector<64x128xf32>
    %18 = arith.addf %15, %17 : vector<64x128xf32>
    %cst_9 = arith.constant 0.000000e+00 : f32
    %19 = vector.broadcast %cst_9 : f32 to vector<64x128xf32>
    %20 = arith.cmpf oge, %18, %19 : vector<64x128xf32>
    %cst_10 = arith.constant 2.000000e-01 : f32
    %21 = vector.broadcast %cst_10 : f32 to vector<64x128xf32>
    %22 = arith.mulf %21, %18 : vector<64x128xf32>
    %23 = arith.select %20, %18, %22 : vector<64x128xi1>, vector<64x128xf32>
    %24 = vector.extract_strided_slice %23 {offsets = [0, 0], sizes = [64, 8], strides = [1, 1]} : vector<64x128xf32> to vector<64x8xf32>
    %c0_11 = arith.constant 0 : index
    %c0_12 = arith.constant 0 : index
    %c0_13 = arith.constant 0 : index
    %25 = vector.load %arg5[%c0_11, %c0_12, %c0_13] : memref<1x64x8xf32, #tpu.memory_space<vmem>>, vector<1x64x8xf32>
    %26 = vector.shape_cast %25 : vector<1x64x8xf32> to vector<64x8xf32>
    %27 = vector.shape_cast %24 : vector<64x8xf32> to vector<1x64x8xf32>
    tpu.vector_store %arg5[%c0_11, %c0_12, %c0_13], %27 {strides = array<i32>} : memref<1x64x8xf32, #tpu.memory_space<vmem>>, vector<1x64x8xf32>,
    return
  }
  func.func @transform_0(%arg0: i32) -> (i32, i32, i32, i32) {
    %c0_i32 = arith.constant 0 : i32
    %c0_i32_0 = arith.constant 0 : i32
    %c0_i32_1 = arith.constant 0 : i32
    %c0_i32_2 = arith.constant 0 : i32
    return %arg0, %c0_i32, %c0_i32_0, %c0_i32_1 : i32, i32, i32, i32
  }
  func.func @transform_1(%arg0: i32) -> (i32, i32) {
    %c0_i32 = arith.constant 0 : i32
    %c0_i32_0 = arith.constant 0 : i32
    %c0_i32_1 = arith.constant 0 : i32
    return %c0_i32, %c0_i32_0 : i32, i32
  }
  func.func @transform_2(%arg0: i32) -> (i32, i32) {
    %c0_i32 = arith.constant 0 : i32
    %c0_i32_0 = arith.constant 0 : i32
    %c0_i32_1 = arith.constant 0 : i32
    return %c0_i32, %c0_i32_0 : i32, i32
  }
  func.func @transform_3(%arg0: i32) -> (i32, i32) {
    %c0_i32 = arith.constant 0 : i32
    %c0_i32_0 = arith.constant 0 : i32
    %c0_i32_1 = arith.constant 0 : i32
    return %c0_i32, %c0_i32_0 : i32, i32
  }
  func.func @transform_4(%arg0: i32) -> (i32, i32, i32) {
    %c0_i32 = arith.constant 0 : i32
    %c0_i32_0 = arith.constant 0 : i32
    %c0_i32_1 = arith.constant 0 : i32
    return %arg0, %c0_i32, %c0_i32_0 : i32, i32, i32
  }
}

</mosaic_0001>

<bundles_post_ra>
// kernel: g_down_block.3
= control target key start
LH: loop header
LB: loop body
LE: loop exit
PB: predicated region body
PF: predicated region fallthrough
CT: control target
= control target key end

     0   :  { %s797_s15 = smov 0   ;;  %s987_s0 = inlined_call_operand.vmem [shape: bf16[2,9,9,16], index: 0, kind: input, shape index: {}]   ;;  %s988_s1 = inlined_call_operand.vmem [shape: bf16[64,128], index: 1, kind: input, shape index: {}]   ;;  %s989_s2 = inlined_call_operand.vmem [shape: f32[1,128], index: 2, kind: input, shape index: {}]   ;;  %s990_s3 = inlined_call_operand.vmem [shape: f32[1,128], index: 3, kind: input, shape index: {}]   ;;  %s991_s4 = inlined_call_operand.vmem [shape: f32[2,64,8], index: 4, kind: output, shape index: {}]  }
   0x1 LB: > { %s668_s16 = sadd.s32 4294967295, %s767_s15   ;;  %p672_p0 = scmp.ge.s32.totalorder %s767_s15, 1  ;;  %s767_s15 = sphi %s797_s15, %s14_s15  }
   0x2   : > { %p162_p1 = scmp.lt.s32.totalorder %s767_s15, 3 }
   0x4   : > { %p163_p2 = pnand %p672_p0, %p162_p1 }
   0x5   : > { %p188_p3 = scmp.lt.s32.totalorder (!%p163_p2), %s668_s16, 1  ;;  %s769_s23 = smov (!%p163_p2), 32  }
   0x6   : > { %166 = sbr.rel (%p163_p2) target bundleno = 374 (0x176), region = 36  ;;  %s770_s30 = smov (!%p163_p2), 16  }
   0x7   : > { %s771_s5 = smov (!%p163_p2), 48  }
   0xb   : > { %s995_s16 = smov (!%p188_p3, %s668_s16), 1  ;;  %v753_v0 = vld [vmem:[%s988_s1 + $0x18] sm:$0xff]   ;;  %vm217_vm0 = vsmask.f32 3328  ;;  %vm218_vm1 = vsmask.f32 7440 }
   0xc   : > { %s737_s19 = smul.u32 72, %s995_s16  ;;  %713 = vmatprep.subr.bf16.mxu0 %v753_v0  ;;  %729 = vmatprep.subr.bf16.mxu1 %v753_v0  ;;  %vm882_vm2 = vmor %vm217_vm0, %vm218_vm1  ;;  %vm413_vm3 = vcmask 130048   ;;  %vm435_vm4 = vcmask 392192   ;;  %vm426_vm5 = vcmask 261120   ;;  %vm476_vm6 = vcmask 523264   ;;  %s704_s10 = sshll.u32 %s995_s16, 6 }
   0xd   : > { %714 = vmatpush3.bf16.msra.mxu0 %v753_v0  ;;  %733 = vmatpush3.bf16.msra.mxu1 %v753_v0  ;;  %vm604_vm7 = vcmask 64512   ;;  %s966_s13 = scalar_lea.vmem %s991_s4, %s704_s10 }
   0xe   : > { %s814_s22 = scalar_lea.vmem %s987_s0, %s737_s19 }
   0xf   : > { %v817_v1 = vld [vmem:[%s814_s22 + $0x28] sm:$0xf]  ;;  %v820_v2 = vld [vmem:[%s814_s22 + $0x30] sm:$0xf]  ;;  %v839_v13 = vld [vmem:[%s814_s22 + $0x38] sm:$0xf] }
  0x10   : > { %v823_v3 = vld [vmem:[%s814_s22 + $0x8] sm:$0xf]  ;;  %v305_v4 = vshrl.u32 %v820_v2, 16  ;;  %v308_v5 = vshll.u32 %v820_v2, 16  ;;  %v686_v6 = vcombine.low %v817_v1, %v820_v2  ;;  %v291_v7 = vshrl.u32 %v817_v1, 16 }
  0x11   : > { %v831_v8 = vld [vmem:[%s814_s22 + $0x10] sm:$0xf]  ;;  %v294_v9 = vshll.u32 %v817_v1, 16  ;;  %v235_v17 = vshrl.u32 %v823_v3, 16  ;;  %v215_v18 = vld [vmem:[%s814_s22 + $0x40] sm:$0xf] }
  0x12   : > { %v249_v10 = vshrl.u32 %v831_v8, 16  ;;  %v252_v11 = vshll.u32 %v831_v8, 16  ;;  %v684_v12 = vcombine.low %v823_v3, %v831_v8  ;;  %v841_v14 = vrot.slane %v305_v4, 4  ;;  %396 = vrot.lane.b32.xlu1 %v686_v6, %s769_s23  ;;  %v855_v23 = vld [vmem:[%s814_s22 + $0x18] sm:$0xf]  ;;  %v756_v4 = vld [vmem:[%s988_s1 + $0x10] sm:$0xff]  }
  0x13   : > { %v843_v15 = vrot.slane %v308_v5, 5  ;;  %v846_v16 = vrot.slane %v291_v7, 4  ;;  %v850_v19 = vrot.slane %v294_v9, 5  ;;  %v238_v22 = vshll.u32 %v823_v3, 16  ;;  %v860_v28 = vld [vmem:[%s814_s22 + $0x20] sm:$0xf]  ;;  %715 = vmatprep.subr.bf16.mxu0 %v756_v4  ;;  %730 = vmatprep.subr.bf16.mxu1 %v756_v4 }
  0x14   : > { %v251_v20 = vrot.slane %v249_v10, 4  ;;  %v254_v21 = vrot.slane %v252_v11, 5  ;;  %392 = vrot.lane.b32.xlu0 %v684_v12, %s769_s23  ;;  %v237_v24 = vrot.slane %v235_v17, 4  ;;  %v319_v25 = vshrl.u32 %v839_v13, 16  ;;  %v204_v33 = vld [vmem:[%s814_s22 + $0x14] sm:$0x1]  ;;  %716 = vmatpush3.bf16.msra.mxu0 %v756_v4 }
  0x15   : > { %v322_v26 = vshll.u32 %v839_v13, 16  ;;  %v333_v27 = vshrl.u32 %v215_v18, 16  ;;  %v240_v29 = vrot.slane %v238_v22, 5  ;;  %v336_v30 = vshll.u32 %v215_v18, 16  ;;  %v206_v38 = vld [vmem:[%s814_s22 + $0x1c] sm:$0x1]  ;;  %734 = vmatpush3.bf16.msra.mxu1 %v756_v4 }
  0x16   : > { %v687_v31 = vcombine.low %v839_v13, %v215_v18  ;;  %v263_v32 = vshrl.u32 %v855_v23, 16  ;;  %v266_v35 = vshll.u32 %v855_v23, 16  ;;  %v277_v36 = vshrl.u32 %v860_v28, 16  ;;  %v877_v43 = vld [vmem:[%s814_s22] sm:$0xf]  ;;  %v759_v10 = vld [vmem:[%s988_s1 + $0x8] sm:$0xff]  }
  0x17   : > { %v865_v34 = vrot.slane %v333_v27, 4  ;;  %v280_v37 = vshll.u32 %v860_v28, 16  ;;  %v871_v39 = vrot.slane %v336_v30, 5  ;;  %v685_v40 = vcombine.low %v855_v23, %v860_v28  ;;  %v200_v44 = vld [vmem:[%s814_s22 + $0x4] sm:$0x1]  ;;  %717 = vmatprep.subr.bf16.mxu0 %v759_v10  ;;  %731 = vmatprep.subr.bf16.mxu1 %v759_v10 }
  0x18   : > { %398 = vrot.lane.b32.xlu1 %v687_v31, %s769_s23  ;;  %v255_v41 = vor.u32 %v254_v21, %v251_v20  ;;  %v258_v42 = vshll.u32 %v204_v33, 16  ;;  %v265_v46 = vrot.slane %v263_v32, 4  ;;  %v268_v47 = vrot.slane %v266_v35, 5  ;;  %v202_v49 = vld [vmem:[%s814_s22 + $0xc] sm:$0x1]  ;;  %v760_v30 = vld [vmem:[%s988_s1] sm:$0xff]   ;;  %718 = vmatpush3.bf16.msra.mxu0 %v759_v10 }
  0x19   : > { %v272_v48 = vshll.u32 %v206_v38, 16  ;;  %v221_v50 = vshrl.u32 %v877_v43, 16  ;;  %394 = vrot.lane.b32.xlu0 %v685_v40, %s769_s23  ;;  %v224_v53 = vshll.u32 %v877_v43, 16  ;;  %v230_v54 = vshll.u32 %v200_v44, 16  ;;  %v212_v55 = vld [vmem:[%s814_s22 + $0x34] sm:$0x1]  ;;  %735 = vmatpush3.bf16.msra.mxu1 %v759_v10 }
  0x1a   : > { %v256_v51 = vrot.slane %v255_v41, 4  ;;  %v260_v52 = vrot.slane %v258_v42, 5  ;;  %v269_v56 = vor.u32 %v268_v47, %v265_v46  ;;  %v241_v59 = vor.u32 %v240_v29, %v237_v24  ;;  %v214_v0 = vld [vmem:[%s814_s22 + $0x3c] sm:$0x1]  ;;  %v210_v29 = vld [vmem:[%s814_s22 + $0x2c] sm:$0x1]  ;;  %719 = vmatprep.subr.bf16.mxu0 %v760_v30  ;;  %732 = vmatprep.subr.bf16.mxu1 %v760_v30 }
  0x1b   : > { %v274_v57 = vrot.slane %v272_v48, 5  ;;  %v223_v58 = vrot.slane %v221_v50, 4  ;;  %v226_v61 = vrot.slane %v224_v53, 5  ;;  %v232_v62 = vrot.slane %v230_v54, 5  ;;  %v216_v44 = vld [vmem:[%s814_s22 + $0x44] sm:$0x1] }
  0x1c   : > { %v893_v60 = vsel %vm882_vm2, %v256_v51, %v260_v52  ;;  %v244_v63 = vshll.u32 %v202_v49, 16  ;;  %v270_v5 = vrot.slane %v269_v56, 4  ;;  %v242_v6 = vrot.slane %v241_v59, 4  ;;  %720 = vmatpush3.bf16.msra.mxu0 %v760_v30 }
  0x1d   : > { %v311_v7 = vor.u32 %v843_v15, %v841_v14  ;;  %v314_v9 = vshll.u32 %v212_v55, 16  ;;  %v227_v11 = vor.u32 %v226_v61, %v223_v58  ;;  %v321_v17 = vrot.slane %v319_v25, 4  ;;  %v208_v14 = vld [vmem:[%s814_s22 + $0x24] sm:$0x1]  ;;  %736 = vmatpush3.bf16.msra.mxu1 %v760_v30 }
  0x1e   : > { %v246_v12 = vrot.slane %v244_v63, 5  ;;  %v324_v18 = vrot.slane %v322_v26, 5  ;;  %v906_v20 = vsel %vm882_vm2, %v270_v5, %v274_v57  ;;  %v328_v24 = vshll.u32 %v214_v0, 16 }
  0x1f   : > { %v312_v21 = vrot.slane %v311_v7, 4  ;;  %v316_v22 = vrot.slane %v314_v9, 5  ;;  %v681_v15 = vcombine.low %v893_v60, %v906_v20  ;;  %v228_v27 = vrot.slane %v227_v11, 4 }
  0x20   : > { %v247_v25 = vsel %vm882_vm2, %v242_v6, %v246_v12  ;;  %v325_v26 = vor.u32 %v324_v18, %v321_v17  ;;  %v330_v32 = vrot.slane %v328_v24, 5  ;;  %v279_v33 = vrot.slane %v277_v36, 4 }
  0x21   : > { %v317_v31 = vsel %vm882_vm2, %v312_v21, %v316_v22  ;;  %v282_v35 = vrot.slane %v280_v37, 5  ;;  %380 = vrot.lane.b32.xlu1 %v681_v15, %s770_s30  ;;  %v233_v38 = vsel %vm882_vm2, %v228_v27, %v232_v62  ;;  %v286_v41 = vshll.u32 %v208_v14, 16  ;;  %v700_v15 = vld [vmem:[%s989_s2] ss:$0 sm:$0xff] }
  0x22   : > { %v326_v40 = vrot.slane %v325_v26, 4  ;;  %v297_v42 = vor.u32 %v850_v19, %v846_v16  ;;  %v680_v46 = vcombine.low %v233_v38, %v247_v25  ;;  %v300_v48 = vshll.u32 %v210_v29, 16  ;;  %v701_v27 = vld [vmem:[%s990_s3] ss:$0 sm:$0xff] }
  0x23   : > { %v283_v47 = vor.u32 %v282_v35, %v279_v33  ;;  %v288_v37 = vrot.slane %v286_v41, 5  ;;  %v339_v50 = vor.u32 %v871_v39, %v865_v34  ;;  %v342_v52 = vshll.u32 %v216_v44, 16 }
  0x24   : > { %v331_v36 = vsel %vm882_vm2, %v326_v40, %v330_v32  ;;  %v298_v49 = vrot.slane %v297_v42, 4  ;;  %378 = vrot.lane.b32.xlu0 %v680_v46, %s770_s30  ;;  %v302_v19 = vrot.slane %v300_v48, 5  ;;  %v677_v54 = vcombine.low %v831_v8, %v855_v23 }
  0x25   : > { %v683_v51 = vcombine.low %v317_v31, %v331_v36  ;;  %v284_v16 = vrot.slane %v283_v47, 4  ;;  %v340_v53 = vrot.slane %v339_v50, 4  ;;  %v676_v55 = vcombine.low %v877_v43, %v823_v3 }
  0x26   : > { %v679_v56 = vcombine.low %v820_v2, %v839_v13  ;;  %v303_v39 = vsel %vm882_vm2, %v298_v49, %v302_v19  ;;  %v344_v57 = vrot.slane %v342_v52, 5  ;;  %v678_v58 = vcombine.low %v860_v28, %v817_v1 }
  0x27   : > { %384 = vrot.lane.b32.xlu1 %v683_v51, %s770_s30  ;;  %v289_v34 = vsel %vm882_vm2, %v284_v16, %v288_v37  ;;  %v690_v23 = vcombine.low %v303_v39, %v317_v31  ;;  %v688_v2 = vcombine.low %v247_v25, %v893_v60 }
  0x28   : > { %v682_v8 = vcombine.low %v289_v34, %v303_v39  ;;  %v345_v3 = vsel %vm882_vm2, %v340_v53, %v344_v57  ;;  %v689_v43 = vcombine.low %v906_v20, %v289_v34 }
  0x29   : > { %v691_v13 = vcombine.low %v331_v36, %v345_v3 }
  0x2a   : > { %382 = vrot.lane.b32.xlu0 %v682_v8, %s770_s30 }
  0x2b   : > { %409 = vrot.lane.b32.xlu1 %v690_v23, %s771_s5 }
  0x2e   : > { %405 = vrot.lane.b32.xlu0 %v688_v2, %s771_s5 }
  0x2f   : > { %411 = vrot.lane.b32.xlu1 %v691_v13, %s771_s5 }
  0x32   : > { %407 = vrot.lane.b32.xlu0 %v689_v43, %s771_s5 }
  0x84   : > { %v397_v1 = vpop.permute.xlu1 %396 }
  0x86   : > { %v393_v28 = vpop.permute.xlu0 %392 }
  0x8a   : > { %v399_v59 = vpop.permute.xlu1 %398 }
  0x8b   : > { %v395_v61 = vpop.permute.xlu0 %394 }
  0x93   : > { %v381_v62 = vpop.permute.xlu1 %380 }
  0x94   : > { %v419_v12 = vsel %vm413_vm3, %v677_v54, %v381_v62 }
  0x95   : > { %v430_v22 = vsel %vm426_vm5, %v419_v12, %v395_v61 }
  0x96   : > { %v379_v63 = vpop.permute.xlu0 %378 }
  0x97   : > { %v416_v4 = vsel %vm413_vm3, %v676_v55, %v379_v63 }
  0x98   : > { %v428_v11 = vsel %vm426_vm5, %v416_v4, %v393_v28 }
  0x99   : > { %v385_v45 = vpop.permute.xlu1 %384 }
  0x9a   : > { %v425_v6 = vsel %vm413_vm3, %v679_v56, %v385_v45 }
  0x9b   : > { %v434_v18 = vsel %vm426_vm5, %v425_v6, %v399_v59 }
  0x9c   : > { %v383_v0 = vpop.permute.xlu0 %382 }
  0x9d   : > { %v422_v60 = vsel %vm413_vm3, %v678_v58, %v383_v0  ;;  %v410_v5 = vpop.permute.xlu1 %409 }
  0x9e   : > { %v432_v7 = vsel %vm426_vm5, %v422_v60, %v397_v1 }
  0x9f   : > { %v441_v9 = vsel %vm435_vm4, %v432_v7, %v410_v5 }
  0xa0   : > { %v406_v10 = vpop.permute.xlu0 %405  ;;  %725 = vmatprep.mubr.msk.bf16.mxu1 %vm476_vm6, %v441_v9 }
  0xa1   : > { %v437_v17 = vsel %vm435_vm4, %v428_v11, %v406_v10  ;;  %v412_v20 = vpop.permute.xlu1 %411 }
  0xa2   : > { %721 = vmatprep.mubr.msk.bf16.mxu0 %vm476_vm6, %v437_v17  ;;  %v443_v21 = vsel %vm435_vm4, %v434_v18, %v412_v20 }
  0xa3   : > { %726 = vmatmul.mubr.msk.bf16.vlgmr.msra.gmra.mxu1 %vm476_vm6, %v443_v21 }
  0xa4   : > { %v408_v24 = vpop.permute.xlu0 %407 }
  0xa5   : > { %v439_v14 = vsel %vm435_vm4, %v430_v22, %v408_v24 }
  0xa6   : > { %722 = vmatmul.mubr.msk.bf16.vlgmr.msra.gmra.mxu0 %vm476_vm6, %v439_v14 }
 0x163   : > { %v727_v25 = vpop.f32.mrf.mxu1 }
 0x164   : > { %v563_v26 = vmul.f32 %v727_v25, %v700_v15 }
 0x165   : > { %v535_v29 = vpop.f32.mrf.mxu1 }
 0x166   : > { %v723_v30 = vpop.f32.mrf.mxu0  ;;  %v578_v31 = vadd.f32 %v701_v27, %v563_v26  ;;  %v561_v32 = vmul.f32 %v700_v15, %v535_v29 }
 0x167   : > { %v559_v33 = vmul.f32 %v723_v30, %v700_v15  ;;  %v728_v35 = vpop.f32.mrf.mxu1 }
 0x168   : > { %vm586_vm8 = vcmp.ge.f32.partialorder %v578_v31, 0.0  ;;  %v594_v38 = vmul.f32 0.2, %v578_v31  ;;  %v519_v40 = vpop.f32.mrf.mxu0  ;;  %v576_v41 = vadd.f32 %v701_v27, %v561_v32  ;;  %v564_v42 = vmul.f32 %v728_v35, %v700_v15 }
 0x169   : > { %v574_v44 = vadd.f32 %v701_v27, %v559_v33  ;;  %v557_v46 = vmul.f32 %v700_v15, %v519_v40  ;;  %v538_v47 = vpop.f32.mrf.mxu1 }
 0x16a   : > { %v602_v48 = vsel %vm586_vm8, %v578_v31, %v594_v38  ;;  %vm584_vm9 = vcmp.ge.f32.partialorder %v576_v41, 0.0  ;;  %v592_v36 = vmul.f32 0.2, %v576_v41  ;;  %v724_v37 = vpop.f32.mrf.mxu0  ;;  %v579_v49 = vadd.f32 %v701_v27, %v564_v42 }
 0x16b   : > { %vm582_vm10 = vcmp.ge.f32.partialorder %v574_v44, 0.0  ;;  %v590_v50 = vmul.f32 0.2, %v574_v44  ;;  %611 = vst.msk [vmem:[%s966_s13 + $0x30] sm:$0xff] %vm604_vm7, %v602_v48  ;;  %v572_v51 = vadd.f32 %v701_v27, %v557_v46  ;;  %v560_v16 = vmul.f32 %v724_v37, %v700_v15 }
 0x16c   : > { %v600_v19 = vsel %vm584_vm9, %v576_v41, %v592_v36  ;;  %vm587_vm11 = vcmp.ge.f32.partialorder %v579_v49, 0.0  ;;  %v595_v52 = vmul.f32 0.2, %v579_v49  ;;  %v522_v53 = vpop.f32.mrf.mxu0  ;;  %v562_v54 = vmul.f32 %v700_v15, %v538_v47 }
 0x16d   : > { %v598_v55 = vsel %vm582_vm10, %v574_v44, %v590_v50  ;;  %vm580_vm12 = vcmp.ge.f32.partialorder %v572_v51, 0.0  ;;  %v588_v56 = vmul.f32 0.2, %v572_v51  ;;  %609 = vst.msk [vmem:[%s966_s13 + $0x20] sm:$0xff] %vm604_vm7, %v600_v19  ;;  %v575_v34 = vadd.f32 %v701_v27, %v560_v16 }
 0x16e   : > { %607 = vst.msk [vmem:[%s966_s13 + $0x10] sm:$0xff] %vm604_vm7, %v598_v55  ;;  %v603_v39 = vsel %vm587_vm11, %v579_v49, %v595_v52  ;;  %v558_v57 = vmul.f32 %v700_v15, %v522_v53  ;;  %v577_v58 = vadd.f32 %v701_v27, %v562_v54 }
 0x16f   : > { %v596_v8 = vsel %vm580_vm12, %v572_v51, %v588_v56  ;;  %vm583_vm13 = vcmp.ge.f32.partialorder %v575_v34, 0.0  ;;  %v591_v23 = vmul.f32 0.2, %v575_v34  ;;  %612 = vst.msk [vmem:[%s966_s13 + $0x38] sm:$0xff] %vm604_vm7, %v603_v39 }
 0x170   : > { %605 = vst.msk [vmem:[%s966_s13] sm:$0xff] %vm604_vm7, %v596_v8  ;;  %v573_v3 = vadd.f32 %v701_v27, %v558_v57  ;;  %vm585_vm14 = vcmp.ge.f32.partialorder %v577_v58, 0.0  ;;  %v593_v2 = vmul.f32 0.2, %v577_v58 }
 0x171   : > { %v599_v13 = vsel %vm583_vm13, %v575_v34, %v591_v23 }
 0x172   : > { %608 = vst.msk [vmem:[%s966_s13 + $0x18] sm:$0xff] %vm604_vm7, %v599_v13  ;;  %vm581_vm15 = vcmp.ge.f32.partialorder %v573_v3, 0.0  ;;  %v589_v43 = vmul.f32 0.2, %v573_v3  ;;  %v601_v1 = vsel %vm585_vm14, %v577_v58, %v593_v2 }
 0x173   : > { %610 = vst.msk [vmem:[%s966_s13 + $0x28] sm:$0xff] %vm604_vm7, %v601_v1 }
 0x174   : > { %v597_v28 = vsel %vm581_vm15, %v573_v3, %v589_v43 }
 0x175   : > { %606 = vst.msk [vmem:[%s966_s13 + $0x8] sm:$0xff] %vm604_vm7, %v597_v28 }
 0x176 PF: > { %s14_s15 = sadd.s32 1, %s767_s15  }
 0x177   : > { %p11_p4 = scmp.ge.s32.totalorder %s14_s15, 4  }
 0x179   :  { %13 = sbr.rel (!%p11_p4) target bundleno = 1 (0x1), region = 66 }

// kernel: g_down_block.2
= control target key start
LH: loop header
LB: loop body
LE: loop exit
PB: predicated region body
PF: predicated region fallthrough
CT: control target
= control target key end

     0   :  { %s708_s9 = smov 0   ;;  %s880_s0 = inlined_call_operand.vmem [shape: bf16[2,9,9,16], index: 0, kind: input, shape index: {}]   ;;  %s881_s1 = inlined_call_operand.vmem [shape: bf16[64,128], index: 1, kind: input, shape index: {}]   ;;  %s882_s2 = inlined_call_operand.vmem [shape: f32[2,2,128], index: 2, kind: output, shape index: {}]  }
   0x1 LB: > { %s593_s10 = sadd.s32 4294967295, %s688_s9   ;;  %p597_p0 = scmp.ge.s32.totalorder %s688_s9, 1  ;;  %s688_s9 = sphi %s708_s9, %s12_s9  }
   0x2   : > { %p112_p1 = scmp.lt.s32.totalorder %s688_s9, 3 }
   0x4   : > { %p113_p2 = pnand %p597_p0, %p112_p1 }
   0x5   : > { %p133_p3 = scmp.lt.s32.totalorder (!%p113_p2), %s593_s10, 1  ;;  %s690_s19 = smov (!%p113_p2), 32  }
   0x6   : > { %116 = sbr.rel (%p113_p2) target bundleno = 418 (0x1a2), region = 28  ;;  %s691_s24 = smov (!%p113_p2), 16  }
   0x7   : > { %s692_s25 = smov (!%p113_p2), 48  }
   0xb   : > { %s886_s10 = smov (!%p133_p3, %s593_s10), 1  ;;  %v674_v0 = vld [vmem:[%s881_s1 + $0x18] sm:$0xff]   ;;  %v675_v1 = vld [vmem:[%s881_s1 + $0x10] sm:$0xff]   ;;  %vm161_vm0 = vsmask.f32 3328  ;;  %v677_v40 = vld [vmem:[%s881_s1 + $0x8] sm:$0xff]  }
   0xc   : > { %s658_s15 = smul.u32 72, %s886_s10  ;;  %634 = vmatprep.subr.bf16.mxu0 %v674_v0  ;;  %650 = vmatprep.subr.bf16.mxu1 %v674_v0  ;;  %vm162_vm1 = vsmask.f32 7440  ;;  %vm357_vm3 = vcmask 130048   ;;  %vm370_vm4 = vcmask 261120   ;;  %vm379_vm5 = vcmask 392192  }
   0xd   : > { %635 = vmatpush3.bf16.msra.mxu0 %v674_v0  ;;  %654 = vmatpush3.bf16.msra.mxu1 %v674_v0  ;;  %vm808_vm2 = vmor %vm161_vm0, %vm162_vm1  ;;  %vm420_vm6 = vcmask 523264   ;;  %s599_s26 = sshll.u32 %s886_s10, 1  ;;  %vm537_vm7 = vcmask 1040384  }
   0xe   : > { %s728_s18 = scalar_lea.vmem %s880_s0, %s658_s15  ;;  %636 = vmatprep.subr.bf16.mxu0 %v675_v1  ;;  %651 = vmatprep.subr.bf16.mxu1 %v675_v1  ;;  %s141_s29 = scalar_lea.vmem %s882_s2, %s599_s26 }
   0xf   : > { %v731_v2 = vld [vmem:[%s728_s18 + $0x8] sm:$0xf]  ;;  %v734_v3 = vld [vmem:[%s728_s18 + $0x10] sm:$0xf]  ;;  %v737_v4 = vld [vmem:[%s728_s18 + $0x18] sm:$0xf] }
  0x10   : > { %v193_v5 = vshrl.u32 %v734_v3, 16  ;;  %v196_v6 = vshll.u32 %v734_v3, 16  ;;  %v608_v7 = vcombine.low %v731_v2, %v734_v3  ;;  %v179_v8 = vshrl.u32 %v731_v2, 16  ;;  %v745_v9 = vld [vmem:[%s728_s18 + $0x20] sm:$0xf] }
  0x11   : > { %v182_v10 = vshll.u32 %v731_v2, 16  ;;  %v207_v11 = vshrl.u32 %v737_v4, 16  ;;  %v210_v12 = vshll.u32 %v737_v4, 16  ;;  %v221_v13 = vshrl.u32 %v745_v9, 16  ;;  %v752_v14 = vld [vmem:[%s728_s18 + $0x28] sm:$0xf]  ;;  %637 = vmatpush3.bf16.msra.mxu0 %v675_v1  ;;  %655 = vmatpush3.bf16.msra.mxu1 %v675_v1 }
  0x12   : > { %v754_v15 = vrot.slane %v193_v5, 4  ;;  %v756_v16 = vrot.slane %v196_v6, 5  ;;  %336 = vrot.lane.b32.xlu1 %v608_v7, %s690_s19  ;;  %v181_v17 = vrot.slane %v179_v8, 4  ;;  %v224_v18 = vshll.u32 %v745_v9, 16  ;;  %v761_v19 = vld [vmem:[%s728_s18 + $0x30] sm:$0xf]  ;;  %638 = vmatprep.subr.bf16.mxu0 %v677_v40 }
  0x13   : > { %v184_v20 = vrot.slane %v182_v10, 5  ;;  %v609_v21 = vcombine.low %v737_v4, %v745_v9  ;;  %v249_v22 = vshrl.u32 %v761_v19, 16  ;;  %v252_v23 = vshll.u32 %v761_v19, 16  ;;  %v768_v24 = vld [vmem:[%s728_s18 + $0x38] sm:$0xf]  ;;  %652 = vmatprep.subr.bf16.mxu1 %v677_v40  ;;  %v679_v6 = vld [vmem:[%s881_s1] sm:$0xff]  }
  0x14   : > { %v610_v25 = vcombine.low %v752_v14, %v761_v19  ;;  %v235_v26 = vshrl.u32 %v752_v14, 16  ;;  %v238_v27 = vshll.u32 %v752_v14, 16  ;;  %v159_v28 = vld [vmem:[%s728_s18 + $0x40] sm:$0xf]  ;;  %v263_v29 = vshrl.u32 %v768_v24, 16 }
  0x15   : > { %v776_v30 = vrot.slane %v249_v22, 4  ;;  %v778_v31 = vrot.slane %v252_v23, 5  ;;  %v266_v32 = vshll.u32 %v768_v24, 16  ;;  %v277_v33 = vshrl.u32 %v159_v28, 16  ;;  %v782_v34 = vld [vmem:[%s728_s18] sm:$0xf]  ;;  %639 = vmatpush3.bf16.msra.mxu0 %v677_v40  ;;  %656 = vmatpush3.bf16.msra.mxu1 %v677_v40 }
  0x16   : > { %338 = vrot.lane.b32.xlu1 %v609_v21, %s690_s19  ;;  %340 = vrot.lane.b32.xlu0 %v610_v25, %s690_s19  ;;  %v786_v35 = vrot.slane %v235_v26, 4  ;;  %v788_v36 = vrot.slane %v238_v27, 5  ;;  %v280_v37 = vshll.u32 %v159_v28, 16  ;;  %v611_v38 = vcombine.low %v768_v24, %v159_v28  ;;  %v144_v39 = vld [vmem:[%s728_s18 + $0x4] sm:$0x1] }
  0x17   : > { %v795_v41 = vrot.slane %v277_v33, 4  ;;  %v146_v42 = vld [vmem:[%s728_s18 + $0xc] sm:$0x1]  ;;  %v165_v43 = vshrl.u32 %v782_v34, 16  ;;  %v168_v44 = vshll.u32 %v782_v34, 16  ;;  %v174_v45 = vshll.u32 %v144_v39, 16  ;;  %640 = vmatprep.subr.bf16.mxu0 %v679_v6  ;;  %653 = vmatprep.subr.bf16.mxu1 %v679_v6 }
  0x18   : > { %v800_v46 = vrot.slane %v280_v37, 5  ;;  %v185_v47 = vor.u32 %v184_v20, %v181_v17  ;;  %v188_v48 = vshll.u32 %v146_v42, 16  ;;  %v150_v49 = vld [vmem:[%s728_s18 + $0x1c] sm:$0x1]  ;;  %v152_v50 = vld [vmem:[%s728_s18 + $0x24] sm:$0x1]  ;;  %v199_v51 = vor.u32 %v756_v16, %v754_v15 }
  0x19   : > { %v167_v53 = vrot.slane %v165_v43, 4  ;;  %v170_v54 = vrot.slane %v168_v44, 5  ;;  %v176_v55 = vrot.slane %v174_v45, 5  ;;  %v209_v56 = vrot.slane %v207_v11, 4  ;;  %v148_v61 = vld [vmem:[%s728_s18 + $0x14] sm:$0x1]  ;;  %641 = vmatpush3.bf16.msra.mxu0 %v679_v6  ;;  %657 = vmatpush3.bf16.msra.mxu1 %v679_v6 }
  0x1a   : > { %342 = vrot.lane.b32.xlu1 %v611_v38, %s690_s19  ;;  %v186_v57 = vrot.slane %v185_v47, 4  ;;  %v190_v58 = vrot.slane %v188_v48, 5  ;;  %v212_v59 = vrot.slane %v210_v12, 5  ;;  %v216_v60 = vshll.u32 %v150_v49, 16  ;;  %v156_v5 = vld [vmem:[%s728_s18 + $0x34] sm:$0x1] }
  0x1b   : > { %v171_v62 = vor.u32 %v170_v54, %v167_v53  ;;  %v223_v63 = vrot.slane %v221_v13, 4  ;;  %v226_v0 = vrot.slane %v224_v18, 5  ;;  %v230_v1 = vshll.u32 %v152_v50, 16  ;;  %v158_v18 = vld [vmem:[%s728_s18 + $0x3c] sm:$0x1] }
  0x1c   : > { %v191_v7 = vsel %vm808_vm2, %v186_v57, %v190_v58  ;;  %v213_v8 = vor.u32 %v212_v59, %v209_v56  ;;  %v218_v10 = vrot.slane %v216_v60, 5  ;;  %v200_v11 = vrot.slane %v199_v51, 4  ;;  %v160_v39 = vld [vmem:[%s728_s18 + $0x44] sm:$0x1]  ;;  %v154_v42 = vld [vmem:[%s728_s18 + $0x2c] sm:$0x1] }
  0x1d   : > { %v172_v15 = vrot.slane %v171_v62, 4  ;;  %v227_v12 = vor.u32 %v226_v0, %v223_v63  ;;  %v232_v16 = vrot.slane %v230_v1, 5  ;;  %v202_v17 = vshll.u32 %v148_v61, 16 }
  0x1e   : > { %v214_v13 = vrot.slane %v213_v8, 4  ;;  %v255_v20 = vor.u32 %v778_v31, %v776_v30  ;;  %v258_v21 = vshll.u32 %v156_v5, 16  ;;  %v265_v22 = vrot.slane %v263_v29, 4 }
  0x1f   : > { %v177_v23 = vsel %vm808_vm2, %v172_v15, %v176_v55  ;;  %v228_v25 = vrot.slane %v227_v12, 4  ;;  %v204_v26 = vrot.slane %v202_v17, 5  ;;  %v268_v27 = vrot.slane %v266_v32, 5 }
  0x20   : > { %v604_v28 = vcombine.low %v177_v23, %v191_v7  ;;  %v219_v33 = vsel %vm808_vm2, %v214_v13, %v218_v10  ;;  %v256_v37 = vrot.slane %v255_v20, 4  ;;  %v260_v38 = vrot.slane %v258_v21, 5 }
  0x21   : > { %v233_v30 = vsel %vm808_vm2, %v228_v25, %v232_v16  ;;  %v205_v29 = vsel %vm808_vm2, %v200_v11, %v204_v26  ;;  %v269_v31 = vor.u32 %v268_v27, %v265_v22  ;;  %v272_v40 = vshll.u32 %v158_v18, 16 }
  0x22   : > { %322 = vrot.lane.b32.xlu0 %v604_v28, %s691_s24  ;;  %v613_v32 = vcombine.low %v219_v33, %v233_v30  ;;  %v605_v43 = vcombine.low %v205_v29, %v219_v33  ;;  %v261_v44 = vsel %vm808_vm2, %v256_v37, %v260_v38  ;;  %v283_v48 = vor.u32 %v800_v46, %v795_v41 }
  0x23   : > { %v270_v45 = vrot.slane %v269_v31, 4  ;;  %v274_v47 = vrot.slane %v272_v40, 5  ;;  %v286_v49 = vshll.u32 %v160_v39, 16  ;;  %v241_v50 = vor.u32 %v788_v36, %v786_v35 }
  0x24   : > { %351 = vrot.lane.b32.xlu1 %v613_v32, %s692_s25  ;;  %v244_v51 = vshll.u32 %v154_v42, 16  ;;  %v600_v53 = vcombine.low %v782_v34, %v731_v2  ;;  %v601_v54 = vcombine.low %v734_v3, %v737_v4  ;;  %v612_v56 = vcombine.low %v191_v7, %v205_v29 }
  0x25   : > { %v275_v55 = vsel %vm808_vm2, %v270_v45, %v274_v47  ;;  %v284_v57 = vrot.slane %v283_v48, 4  ;;  %v288_v58 = vrot.slane %v286_v49, 5  ;;  %v242_v46 = vrot.slane %v241_v50, 4 }
  0x26   : > { %324 = vrot.lane.b32.xlu0 %v605_v43, %s691_s24  ;;  %v607_v41 = vcombine.low %v261_v44, %v275_v55  ;;  %v246_v59 = vrot.slane %v244_v51, 5  ;;  %v603_v35 = vcombine.low %v761_v19, %v768_v24  ;;  %v602_v3 = vcombine.low %v745_v9, %v752_v14 }
  0x27   : > { %v289_v2 = vsel %vm808_vm2, %v284_v57, %v288_v58 }
  0x28   : > { %328 = vrot.lane.b32.xlu1 %v607_v41, %s691_s24  ;;  %v615_v4 = vcombine.low %v275_v55, %v289_v2  ;;  %v247_v34 = vsel %vm808_vm2, %v242_v46, %v246_v59 }
  0x29   : > { %v606_v36 = vcombine.low %v233_v30, %v247_v34  ;;  %v614_v60 = vcombine.low %v247_v34, %v261_v44 }
  0x2a   : > { %349 = vrot.lane.b32.xlu0 %v612_v56, %s692_s25 }
  0x2c   : > { %355 = vrot.lane.b32.xlu1 %v615_v4, %s692_s25 }
  0x2e   : > { %326 = vrot.lane.b32.xlu0 %v606_v36, %s691_s24 }
  0x32   : > { %353 = vrot.lane.b32.xlu0 %v614_v60, %s692_s25 }
  0x84   : > { %v337_v19 = vpop.permute.xlu1 %336 }
  0x88   : > { %v339_v24 = vpop.permute.xlu1 %338  ;;  %v341_v61 = vpop.permute.xlu0 %340 }
  0x8c   : > { %v343_v62 = vpop.permute.xlu1 %342 }
  0x94   : > { %v323_v63 = vpop.permute.xlu0 %322 }
  0x95   : > { %v360_v0 = vsel %vm357_vm3, %v600_v53, %v323_v63 }
  0x96   : > { %v352_v9 = vpop.permute.xlu1 %351  ;;  %v372_v6 = vsel %vm370_vm4, %v360_v0, %v337_v19 }
  0x98   : > { %v325_v14 = vpop.permute.xlu0 %324 }
  0x99   : > { %v363_v52 = vsel %vm357_vm3, %v601_v54, %v325_v14 }
  0x9a   : > { %v374_v1 = vsel %vm370_vm4, %v363_v52, %v339_v24  ;;  %v329_v7 = vpop.permute.xlu1 %328 }
  0x9b   : > { %v383_v10 = vsel %vm379_vm5, %v374_v1, %v352_v9  ;;  %v369_v12 = vsel %vm357_vm3, %v603_v35, %v329_v7 }
  0x9c   : > { %v350_v5 = vpop.permute.xlu0 %349  ;;  %v378_v18 = vsel %vm370_vm4, %v369_v12, %v343_v62 }
  0x9d   : > { %v381_v8 = vsel %vm379_vm5, %v372_v6, %v350_v5 }
  0x9e   : > { %642 = vmatprep.mubr.msk.bf16.mxu0 %vm420_vm6, %v381_v8  ;;  %v356_v16 = vpop.permute.xlu1 %355 }
  0x9f   : > { %643 = vmatmul.mubr.msk.bf16.vlgmr.msra.gmra.mxu0 %vm420_vm6, %v383_v10  ;;  %v387_v21 = vsel %vm379_vm5, %v378_v18, %v356_v16 }
  0xa0   : > { %v327_v11 = vpop.permute.xlu0 %326 }
  0xa1   : > { %v366_v15 = vsel %vm357_vm3, %v602_v3, %v327_v11 }
  0xa2   : > { %v376_v13 = vsel %vm370_vm4, %v366_v15, %v341_v61 }
  0xa4   : > { %v354_v17 = vpop.permute.xlu0 %353 }
  0xa5   : > { %v385_v20 = vsel %vm379_vm5, %v376_v13, %v354_v17 }
  0xa6   : > { %646 = vmatprep.mubr.msk.bf16.mxu1 %vm420_vm6, %v385_v20 }
  0xa7   : > { %647 = vmatmul.mubr.msk.bf16.vlgmr.msra.gmra.mxu1 %vm420_vm6, %v387_v21 }
 0x15f   : > { %v644_v22 = vpop.f32.mrf.mxu0 }
 0x161   : > { %v463_v23 = vpop.f32.mrf.mxu0 }
 0x163   : > { %v645_v25 = vpop.f32.mrf.mxu0 }
 0x165   : > { %v466_v26 = vpop.f32.mrf.mxu0 }
 0x166   : > { %v494_v27 = vadd.f32 %v466_v26, %v463_v23 }
 0x167   : > { %v648_v28 = vpop.f32.mrf.mxu1 }
 0x168   : > { %v495_v33 = vadd.f32 %v644_v22, %v494_v27 }
 0x169   : > { %v479_v37 = vpop.f32.mrf.mxu1 }
 0x16a   : > { %v496_v38 = vadd.f32 %v645_v25, %v495_v33 }
 0x16b   : > { %v649_v39 = vpop.f32.mrf.mxu1 }
 0x16c   : > { %v497_v30 = vadd.f32 %v496_v38, %v479_v37 }
 0x16d   : > { %v482_v29 = vpop.f32.mrf.mxu1 }
 0x16e   : > { %v498_v31 = vadd.f32 %v497_v30, %v482_v29 }
 0x170   : > { %v499_v40 = vadd.f32 %v648_v28, %v498_v31 }
 0x172   : > { %v500_v42 = vadd.f32 %v649_v39, %v499_v40 }
 0x174   : > { %v501_v32 = vrot.slane %v500_v42, 4 }
 0x176   : > { %v502_v43 = vadd.f32 %v501_v32, %v500_v42 }
 0x178   : > { %v503_v44 = vrot.slane %v502_v43, 2 }
 0x17a   : > { %v504_v45 = vadd.f32 %v503_v44, %v502_v43 }
 0x17c   : > { %v505_v47 = vrot.slane %v504_v45, 1 }
 0x17e   : > { %v506_v48 = vadd.f32 %v505_v47, %v504_v45 }
 0x180   : > { %v507_v49 = vmul.f32 0.015625, %v506_v48 }
 0x182   : > { %v508_v50 = vsub.f32 %v463_v23, %v507_v49  ;;  %v509_v51 = vsub.f32 %v466_v26, %v507_v49  ;;  %v510_v53 = vsub.f32 %v644_v22, %v507_v49  ;;  %v511_v54 = vsub.f32 %v645_v25, %v507_v49 }
 0x183   : > { %v512_v57 = vsub.f32 %v479_v37, %v507_v49  ;;  %v513_v46 = vsub.f32 %v482_v29, %v507_v49  ;;  %v514_v2 = vsub.f32 %v648_v28, %v507_v49  ;;  %v515_v34 = vsub.f32 %v649_v39, %v507_v49 }
 0x184   : > { %v516_v55 = vmul.f32 %v508_v50, %v508_v50  ;;  %v517_v56 = vmul.f32 %v509_v51, %v509_v51  ;;  %v518_v58 = vmul.f32 %v510_v53, %v510_v53  ;;  %v519_v59 = vmul.f32 %v511_v54, %v511_v54 }
 0x185   : > { %v520_v3 = vmul.f32 %v512_v57, %v512_v57  ;;  %v521_v36 = vmul.f32 %v513_v46, %v513_v46  ;;  %v522_v19 = vmul.f32 %v514_v2, %v514_v2  ;;  %v523_v61 = vmul.f32 %v515_v34, %v515_v34 }
 0x186   : > { %v524_v41 = vadd.f32 %v517_v56, %v516_v55 }
 0x188   : > { %v525_v35 = vadd.f32 %v524_v41, %v518_v58 }
 0x18a   : > { %v526_v4 = vadd.f32 %v525_v35, %v519_v59 }
 0x18c   : > { %v527_v60 = vadd.f32 %v526_v4, %v520_v3 }
 0x18e   : > { %v528_v24 = vadd.f32 %v527_v60, %v521_v36 }
 0x190   : > { %v529_v62 = vadd.f32 %v528_v24, %v522_v19 }
 0x192   : > { %v530_v63 = vadd.f32 %v529_v62, %v523_v61 }
 0x194   : > { %v531_v9 = vrot.slane %v530_v63, 4 }
 0x196   : > { %v532_v14 = vadd.f32 %v531_v9, %v530_v63 }
 0x198   : > { %v533_v0 = vrot.slane %v532_v14, 2 }
 0x19a   : > { %v534_v52 = vadd.f32 %v533_v0, %v532_v14 }
 0x19c   : > { %v535_v1 = vrot.slane %v534_v52, 1 }
 0x19e   : > { %v536_v5 = vadd.f32 %v535_v1, %v534_v52 }
 0x1a0   : > { %v538_v6 = vsel %vm537_vm7, %v506_v48, %v536_v5 }
 0x1a1   : > { %539 = vst [vmem:[%s141_s29] sm:$0x3] %v538_v6 }
 0x1a2 PF: > { %s12_s9 = sadd.s32 1, %s688_s9  }
 0x1a3   : > { %p9_p4 = scmp.ge.s32.totalorder %s12_s9, 4  }
 0x1a5   :  { %11 = sbr.rel (!%p9_p4) target bundleno = 1 (0x1), region = 58 }

</bundles_post_ra>
